<compile_context>
chip_gen: v7x
topology: tpu7x:2x2x1
jax: 0.10.0
libtpu: 0.0.40
codegen_flags: <defaults>
</compile_context>

<pallas_src>
import math

import jax
import jax.numpy as jnp
from jax.experimental import pallas as pl
from jax.experimental.pallas import tpu as pltpu


# ---------------------------------------------------------------------------
# Tile-size / VMEM policy (shared by both paths)
# ---------------------------------------------------------------------------
_TILE_TARGET_BYTES = 8 * 1024 * 1024    # aim ~8 MiB of in+out tile data per grid step
_TILE_MAX_BYTES = 24 * 1024 * 1024      # cap on double-buffered in+out tiles (v7x: 64 MiB VMEM)
_VMEM_LIMIT_CAP = 40 * 1024 * 1024      # leave headroom for Mosaic internal scratch on v7x


def _vmem_limit_bytes(tile_bytes_double_buffered, resident_bytes):
    need = tile_bytes_double_buffered + 2 * resident_bytes + (4 << 20)
    return int(min(max(need, 16 << 20), _VMEM_LIMIT_CAP))


# ---------------------------------------------------------------------------
# Fused path: maxpool(2) + 1x1 conv + bias + PReLU in one kernel
# ---------------------------------------------------------------------------
def _make_fused_kernel(wp):
    """Kernel over one tile of pooled rows (super-row input layout)."""
    w2 = 2 * wp

    def kernel(x_ref, w_ref, b_ref, alpha_ref, o_ref):
        # x_ref:     (C, th, 4*wp)  raw pixels; super-row t = [raw row 2t | raw row 2t+1]
        # w_ref:     (C, C)         1x1 conv weight (out, in), VMEM resident
        # b_ref:     (C, 1)         conv bias (f32), broadcast along lanes
        # alpha_ref: (1, 1)         PReLU slope (SMEM scalar)
        # o_ref:     (C, th*wp)     lane-dense pooled pixels
        t00 = x_ref[:, :, pl.ds(0, wp, 2)]        # raw (2t,   2q)
        t01 = x_ref[:, :, pl.ds(1, wp, 2)]        # raw (2t,   2q+1)
        t10 = x_ref[:, :, pl.ds(w2, wp, 2)]       # raw (2t+1, 2q)
        t11 = x_ref[:, :, pl.ds(w2 + 1, wp, 2)]   # raw (2t+1, 2q+1)
        pooled = jnp.maximum(jnp.maximum(t00, t01), jnp.maximum(t10, t11))
        c, th = pooled.shape[0], pooled.shape[1]
        pooled2 = pooled.reshape(c, th * wp)      # lane-dense pooled pixel tile
        y = jnp.dot(w_ref[...], pooled2, preferred_element_type=jnp.float32)
        y = y + b_ref[...]
        alpha = alpha_ref[0, 0]
        o_ref[...] = jnp.where(y >= 0.0, y, alpha * y).astype(o_ref.dtype)

    return kernel


def _pick_row_tile(hp, wp, c, itemsize, batch):
    """Pooled-row tile `th`: th % 8 == 0 and th*wp % 128 == 0 (or full extent)."""
    per_px_db = 10 * c * itemsize            # 4 input px + 1 output px, double-buffered
    per_px_sb = 5 * c * itemsize
    cap_px = max(1, _TILE_MAX_BYTES // per_px_db)
    tgt_px = max(1, _TILE_TARGET_BYTES // per_px_sb)

    g = 128 // math.gcd(wp, 128)              # th % g == 0  => th*wp % 128 == 0
    unit = (8 * g) // math.gcd(8, g)          # lcm(8, g): also sublane-aligned x block

    want = min(hp, max(1, min(cap_px, tgt_px) // wp))
    th = (want // unit) * unit
    if th == 0:
        if unit <= hp and unit * wp <= cap_px:
            th = unit
        elif hp * wp <= cap_px:
            th = hp                            # whole image per step (full-extent block)
        else:
            return None                        # cannot tile legally within budget

    # keep >= ~4 grid steps around so both v7x TensorCores get work
    if batch * ((hp + th - 1) // th) < 4:
        if th != hp and (th // 2 // unit) * unit >= unit:
            th = (th // 2 // unit) * unit
        elif th == hp and (hp // 2 // unit) * unit >= unit:
            th = (hp // 2 // unit) * unit
    return th


def _down_retain_fused(x_sr, w_mat, b_col, alpha, hp, wp, th, out_dtype):
    B, C = x_sr.shape[0], x_sr.shape[1]
    L = hp * wp
    itemsize = jnp.dtype(x_sr.dtype).itemsize
    grid = (B, (hp + th - 1) // th)

    tile_db = 2 * (C * th * 4 * wp + C * th * wp) * itemsize
    resident = C * C * jnp.dtype(w_mat.dtype).itemsize + C * 4 + 4
    flops = 2 * B * L * C * C
    bytes_accessed = B * 5 * L * C * itemsize + C * C * 4 + C * 4

    return pl.pallas_call(
        _make_fused_kernel(wp),
        out_shape=jax.ShapeDtypeStruct((B, C, L), out_dtype),
        grid_spec=pltpu.PrefetchScalarGridSpec(
            num_scalar_prefetch=0,
            grid=grid,
            in_specs=[
                pl.BlockSpec((None, C, th, 4 * wp), lambda b, r: (b, 0, r, 0)),
                pl.BlockSpec((C, C), lambda b, r: (0, 0)),
                pl.BlockSpec((C, 1), lambda b, r: (0, 0)),
                pl.BlockSpec(memory_space=pltpu.MemorySpace.SMEM),
            ],
            out_specs=pl.BlockSpec((None, C, th * wp), lambda b, r: (b, 0, r)),
        ),
        compiler_params=pltpu.CompilerParams(
            dimension_semantics=("parallel", "parallel"),
            vmem_limit_bytes=_vmem_limit_bytes(tile_db, resident),
        ),
        cost_estimate=pl.CostEstimate(
            flops=flops, transcendentals=0, bytes_accessed=bytes_accessed),
    )(x_sr, w_mat, b_col, alpha)


# ---------------------------------------------------------------------------
# Fallback path: wrapper-side maxpool + (1x1 conv + PReLU) kernel (known-good)
# ---------------------------------------------------------------------------
def _conv1x1_prelu_kernel(x_ref, w_ref, b_ref, alpha_ref, o_ref):
    y = jnp.dot(w_ref[...], x_ref[...], preferred_element_type=jnp.float32)
    y = y + b_ref[...]
    alpha = alpha_ref[0, 0]
    o_ref[...] = jnp.where(y >= 0.0, y, alpha * y).astype(o_ref.dtype)


def _pick_lane_tile(L, c, itemsize, batch):
    cap = max(128, _TILE_MAX_BYTES // (4 * c * itemsize))
    tgt = max(128, _TILE_TARGET_BYTES // (2 * c * itemsize))
    tl = min(cap, tgt)
    if tl >= L:
        tl = L                                   # single full block
    else:
        tl = max(128, (tl // 128) * 128)         # lane-dense tiles
    # expose >= ~4 grid steps for v7x's two TensorCores when the image is big enough
    if batch * ((L + tl - 1) // tl) < 4 and L >= 4 * 128:
        want_blocks = (4 + batch - 1) // batch
        tl = min(tl, max(128, (((L + want_blocks - 1) // want_blocks) // 128) * 128))
    return tl


def _down_retain_unfused(pooled_mat, w_mat, b_col, alpha, out_dtype):
    B, C, L = pooled_mat.shape
    itemsize = jnp.dtype(pooled_mat.dtype).itemsize
    tl = _pick_lane_tile(L, C, itemsize, B)
    grid = (B, (L + tl - 1) // tl)

    tile_db = 2 * (2 * C * tl) * itemsize
    resident = C * C * jnp.dtype(w_mat.dtype).itemsize + C * 4 + 4
    flops = 2 * B * L * C * C
    bytes_accessed = B * 2 * L * C * itemsize + C * C * 4 + C * 4

    return pl.pallas_call(
        _conv1x1_prelu_kernel,
        out_shape=jax.ShapeDtypeStruct((B, C, L), out_dtype),
        grid_spec=pltpu.PrefetchScalarGridSpec(
            num_scalar_prefetch=0,
            grid=grid,
            in_specs=[
                pl.BlockSpec((None, C, tl), lambda b, l: (b, 0, l)),
                pl.BlockSpec((C, C), lambda b, l: (0, 0)),
                pl.BlockSpec((C, 1), lambda b, l: (0, 0)),
                pl.BlockSpec(memory_space=pltpu.MemorySpace.SMEM),
            ],
            out_specs=pl.BlockSpec((None, C, tl), lambda b, l: (b, 0, l)),
        ),
        compiler_params=pltpu.CompilerParams(
            dimension_semantics=("parallel", "parallel"),
            vmem_limit_bytes=_vmem_limit_bytes(tile_db, resident),
        ),
        cost_estimate=pl.CostEstimate(
            flops=flops, transcendentals=0, bytes_accessed=bytes_accessed),
    )(pooled_mat, w_mat, b_col, alpha)


# ---------------------------------------------------------------------------
# Public forward
# ---------------------------------------------------------------------------
_FUSED_POOL_OK = True   # flipped off (once) if the fused kernel fails to lower


def down_retain_forward(x_nchw, conv_w, conv_b, prelu_alpha):
    """Equivalent of _down_retain.forward.

    x_nchw:      (B, C, H, W)
    conv_w:      (C, C, 1, 1)  Conv2d weight (out, in, kh, kw)
    conv_b:      (C,)          Conv2d bias
    prelu_alpha: scalar        PReLU weight (num_parameters=1)
    returns:     (B, C, H//2, W//2)
    """
    global _FUSED_POOL_OK
    B, C, H, W = x_nchw.shape
    hp, wp = H // 2, W // 2
    L = hp * wp

    compute_dtype = jnp.bfloat16 if x_nchw.dtype == jnp.bfloat16 else jnp.float32
    if L == 0:
        return jnp.zeros((B, C, hp, wp), dtype=compute_dtype)

    xc = x_nchw[:, :, : 2 * hp, : 2 * wp].astype(compute_dtype)   # MaxPool2d floor-mode crop
    w_mat = conv_w[:, :, 0, 0].astype(compute_dtype)              # (Cout, Cin)
    b_col = conv_b.reshape(C, 1).astype(jnp.float32)
    alpha = jnp.asarray(prelu_alpha, jnp.float32).reshape(1, 1)

    itemsize = jnp.dtype(compute_dtype).itemsize

    # ---- preferred: fused maxpool + conv + PReLU -------------------------
    if _FUSED_POOL_OK:
        th = _pick_row_tile(hp, wp, C, itemsize, B)
        if th is not None:
            # Free reshape: super-row p = [raw row 2p | raw row 2p+1]
            x_sr = xc.reshape(B, C, hp, 4 * wp)
            try:
                y = _down_retain_fused(x_sr, w_mat, b_col, alpha, hp, wp, th,
                                       compute_dtype)
                return y.reshape(B, C, hp, wp)
            except Exception:
                # Mosaic build without minor-dim strided loads / reshape
                # support: fall back to the portable unfused pipeline.
                _FUSED_POOL_OK = False

    # ---- fallback: pool in JAX, conv + PReLU in Pallas -------------------
    pooled = xc.reshape(B, C, hp, 2, wp, 2).max(axis=(3, 5))      # (B, C, hp, wp)
    y = _down_retain_unfused(pooled.reshape(B, C, L), w_mat, b_col, alpha,
                             compute_dtype)
    return y.reshape(B, C, hp, wp)


# ---------------------------------------------------------------------------
# Self-test
# ---------------------------------------------------------------------------
def _reference(x, conv_w, conv_b, alpha):
    B, C, H, W = x.shape
    hp, wp = H // 2, W // 2
    xc = x[:, :, : 2 * hp, : 2 * wp].astype(jnp.float32)
    pooled = xc.reshape(B, C, hp, 2, wp, 2).max(axis=(3, 5))
    y = jnp.einsum("oc,bchw->bohw", conv_w[:, :, 0, 0].astype(jnp.float32), pooled)
    y = y + conv_b[None, :, None, None]
    return jnp.where(y >= 0, y, alpha * y)


if __name__ == "__main__":
    key = jax.random.PRNGKey(0)

    # small shapes: standard, multi-row-tile, odd (floor-mode crop)
    shapes = [(2, 4, 16, 16), (1, 16, 32, 32), (1, 8, 17, 17)]
    for (B, C, H, W) in shapes:
        key, k1, k2, k3 = jax.random.split(key, 4)
        x = jax.random.normal(k1, (B, C, H, W), dtype=jnp.float32)
        conv_w = jax.random.normal(k2, (C, C, 1, 1), dtype=jnp.float32) * 0.1
        conv_b = jax.random.normal(k3, (C,), dtype=jnp.float32) * 0.1
        prelu_alpha = jnp.float32(0.25)   # PyTorch nn.PReLU() default init

        out = down_retain_forward(x, conv_w, conv_b, prelu_alpha)
        out = jax.block_until_ready(out)

        ref = _reference(x, conv_w, conv_b, prelu_alpha)
        assert out.shape == (B, C, H // 2, W // 2), (B, C, H, W)
        assert jnp.allclose(out, ref, atol=1e-4, rtol=1e-4), (B, C, H, W)

    print("KERNEL_OK")
</pallas_src>

<mosaic_0001>
module attributes {stable_mosaic.version = 11 : i64} {
  func.func @kernel(%arg0: i32, %arg1: i32, %arg2: memref<1x4x8x32xf32, #tpu.memory_space<vmem>>, %arg3: memref<4x4xf32, #tpu.memory_space<vmem>>, %arg4: memref<4x1xf32, #tpu.memory_space<vmem>>, %arg5: memref<1x1xf32, #tpu.memory_space<smem>>, %arg6: memref<1x4x64xf32, #tpu.memory_space<vmem>>) attributes {dimension_semantics = [#tpu.dimension_semantics<parallel>, #tpu.dimension_semantics<parallel>], iteration_bounds = array<i64: 2, 1>, scalar_prefetch = 0 : i64, scratch_operands = 0 : i64, tpu.core_type = #tpu.core_type<tc>, window_params = [{transform_indices = @transform_0, window_bounds = array<i64: 1, 4, 8, 32>}, {pipeline_mode = #tpu.pipeline_mode<synchronous>, transform_indices = @transform_1, window_bounds = array<i64: 4, 4>}, {pipeline_mode = #tpu.pipeline_mode<synchronous>, transform_indices = @transform_2, window_bounds = array<i64: 4, 1>}, {transform_indices = @transform_3, window_bounds = array<i64: 1, 1>}, {transform_indices = @transform_4, window_bounds = array<i64: 1, 4, 64>}]} {
    %c0 = arith.constant 0 : index
    %c0_0 = arith.constant 0 : index
    %c0_1 = arith.constant 0 : index
    %c0_2 = arith.constant 0 : index
    %0 = tpu.strided_load %arg2[%c0, %c0_0, %c0_1, %c0_2] {strides = array<i32: 1, 1, 1, 2>} : memref<1x4x8x32xf32, #tpu.memory_space<vmem>>, vector<1x4x8x8xf32>
    %1 = vector.shape_cast %0 : vector<1x4x8x8xf32> to vector<4x8x8xf32>
    %c0_3 = arith.constant 0 : index
    %c0_4 = arith.constant 0 : index
    %c0_5 = arith.constant 0 : index
    %c1 = arith.constant 1 : index
    %2 = tpu.strided_load %arg2[%c0_3, %c0_4, %c0_5, %c1] {strides = array<i32: 1, 1, 1, 2>} : memref<1x4x8x32xf32, #tpu.memory_space<vmem>>, vector<1x4x8x8xf32>
    %3 = vector.shape_cast %2 : vector<1x4x8x8xf32> to vector<4x8x8xf32>
    %c0_6 = arith.constant 0 : index
    %c0_7 = arith.constant 0 : index
    %c0_8 = arith.constant 0 : index
    %c16 = arith.constant 16 : index
    %4 = tpu.strided_load %arg2[%c0_6, %c0_7, %c0_8, %c16] {strides = array<i32: 1, 1, 1, 2>} : memref<1x4x8x32xf32, #tpu.memory_space<vmem>>, vector<1x4x8x8xf32>
    %5 = vector.shape_cast %4 : vector<1x4x8x8xf32> to vector<4x8x8xf32>
    %c0_9 = arith.constant 0 : index
    %c0_10 = arith.constant 0 : index
    %c0_11 = arith.constant 0 : index
    %c17 = arith.constant 17 : index
    %6 = tpu.strided_load %arg2[%c0_9, %c0_10, %c0_11, %c17] {strides = array<i32: 1, 1, 1, 2>} : memref<1x4x8x32xf32, #tpu.memory_space<vmem>>, vector<1x4x8x8xf32>
    %7 = vector.shape_cast %6 : vector<1x4x8x8xf32> to vector<4x8x8xf32>
    %8 = arith.maximumf %1, %3 : vector<4x8x8xf32>
    %9 = arith.maximumf %5, %7 : vector<4x8x8xf32>
    %10 = arith.maximumf %8, %9 : vector<4x8x8xf32>
    %11 = vector.shape_cast %10 : vector<4x8x8xf32> to vector<4x64xf32>
    %c0_12 = arith.constant 0 : index
    %c0_13 = arith.constant 0 : index
    %12 = vector.load %arg3[%c0_12, %c0_13] : memref<4x4xf32, #tpu.memory_space<vmem>>, vector<4x4xf32>
    %cst = arith.constant dense<0.000000e+00> : vector<4x64xf32>
    %13 = tpu.matmul %12, %11, %cst {dimension_numbers = #tpu.dot_dimension_numbers<[1], [0], [0], [1], [0, 0, 1, 1], [], []>} : vector<4x4xf32>, vector<4x64xf32>, vector<4x64xf32> -> vector<4x64xf32>
    %c0_14 = arith.constant 0 : index
    %c0_15 = arith.constant 0 : index
    %14 = vector.load %arg4[%c0_14, %c0_15] : memref<4x1xf32, #tpu.memory_space<vmem>>, vector<4x1xf32>
    %15 = vector.broadcast %14 : vector<4x1xf32> to vector<4x64xf32>
    %16 = arith.addf %13, %15 : vector<4x64xf32>
    %c0_16 = arith.constant 0 : index
    %c0_17 = arith.constant 0 : index
    %17 = memref.load %arg5[%c0_16, %c0_17] : memref<1x1xf32, #tpu.memory_space<smem>>
    %cst_18 = arith.constant 0.000000e+00 : f32
    %18 = vector.broadcast %cst_18 : f32 to vector<4x64xf32>
    %19 = arith.cmpf oge, %16, %18 : vector<4x64xf32>
    %20 = vector.broadcast %17 : f32 to vector<4x64xf32>
    %21 = arith.mulf %20, %16 : vector<4x64xf32>
    %22 = arith.select %19, %16, %21 : vector<4x64xi1>, vector<4x64xf32>
    %c0_19 = arith.constant 0 : index
    %c0_20 = arith.constant 0 : index
    %c0_21 = arith.constant 0 : index
    %23 = vector.load %arg6[%c0_19, %c0_20, %c0_21] : memref<1x4x64xf32, #tpu.memory_space<vmem>>, vector<1x4x64xf32>
    %24 = vector.shape_cast %23 : vector<1x4x64xf32> to vector<4x64xf32>
    %25 = vector.shape_cast %22 : vector<4x64xf32> to vector<1x4x64xf32>
    tpu.vector_store %arg6[%c0_19, %c0_20, %c0_21], %25 {strides = array<i32>} : memref<1x4x64xf32, #tpu.memory_space<vmem>>, vector<1x4x64xf32>,
    return
  }
  func.func @transform_0(%arg0: i32, %arg1: i32) -> (i32, i32, i32, i32) {
    %c0_i32 = arith.constant 0 : i32
    %c0_i32_0 = arith.constant 0 : i32
    %c0_i32_1 = arith.constant 0 : i32
    return %arg0, %c0_i32, %arg1, %c0_i32_0 : i32, i32, i32, i32
  }
  func.func @transform_1(%arg0: i32, %arg1: i32) -> (i32, i32) {
    %c0_i32 = arith.constant 0 : i32
    %c0_i32_0 = arith.constant 0 : i32
    %c0_i32_1 = arith.constant 0 : i32
    return %c0_i32, %c0_i32_0 : i32, i32
  }
  func.func @transform_2(%arg0: i32, %arg1: i32) -> (i32, i32) {
    %c0_i32 = arith.constant 0 : i32
    %c0_i32_0 = arith.constant 0 : i32
    %c0_i32_1 = arith.constant 0 : i32
    return %c0_i32, %c0_i32_0 : i32, i32
  }
  func.func @transform_3(%arg0: i32, %arg1: i32) -> (i32, i32) {
    %c0_i32 = arith.constant 0 : i32
    %c0_i32_0 = arith.constant 0 : i32
    %c0_i32_1 = arith.constant 0 : i32
    return %c0_i32, %c0_i32_0 : i32, i32
  }
  func.func @transform_4(%arg0: i32, %arg1: i32) -> (i32, i32, i32) {
    %c0_i32 = arith.constant 0 : i32
    %c0_i32_0 = arith.constant 0 : i32
    return %arg0, %c0_i32, %arg1 : i32, i32, i32
  }
}

module attributes {stable_mosaic.version = 11 : i64} {
  func.func @_conv1x1_prelu_kernel(%arg0: i32, %arg1: i32, %arg2: memref<1x4x64xf32, #tpu.memory_space<vmem>>, %arg3: memref<4x4xf32, #tpu.memory_space<vmem>>, %arg4: memref<4x1xf32, #tpu.memory_space<vmem>>, %arg5: memref<1x1xf32, #tpu.memory_space<smem>>, %arg6: memref<1x4x64xf32, #tpu.memory_space<vmem>>) attributes {dimension_semantics = [#tpu.dimension_semantics<parallel>, #tpu.dimension_semantics<parallel>], iteration_bounds = array<i64: 2, 1>, scalar_prefetch = 0 : i64, scratch_operands = 0 : i64, tpu.core_type = #tpu.core_type<tc>, window_params = [{transform_indices = @transform_0, window_bounds = array<i64: 1, 4, 64>}, {pipeline_mode = #tpu.pipeline_mode<synchronous>, transform_indices = @transform_1, window_bounds = array<i64: 4, 4>}, {pipeline_mode = #tpu.pipeline_mode<synchronous>, transform_indices = @transform_2, window_bounds = array<i64: 4, 1>}, {transform_indices = @transform_3, window_bounds = array<i64: 1, 1>}, {transform_indices = @transform_4, window_bounds = array<i64: 1, 4, 64>}]} {
    %c0 = arith.constant 0 : index
    %c0_0 = arith.constant 0 : index
    %0 = vector.load %arg3[%c0, %c0_0] : memref<4x4xf32, #tpu.memory_space<vmem>>, vector<4x4xf32>
    %c0_1 = arith.constant 0 : index
    %c0_2 = arith.constant 0 : index
    %c0_3 = arith.constant 0 : index
    %1 = vector.load %arg2[%c0_1, %c0_2, %c0_3] : memref<1x4x64xf32, #tpu.memory_space<vmem>>, vector<1x4x64xf32>
    %2 = vector.shape_cast %1 : vector<1x4x64xf32> to vector<4x64xf32>
    %cst = arith.constant dense<0.000000e+00> : vector<4x64xf32>
    %3 = tpu.matmul %0, %2, %cst {dimension_numbers = #tpu.dot_dimension_numbers<[1], [0], [0], [1], [0, 0, 1, 1], [], []>} : vector<4x4xf32>, vector<4x64xf32>, vector<4x64xf32> -> vector<4x64xf32>
    %c0_4 = arith.constant 0 : index
    %c0_5 = arith.constant 0 : index
    %4 = vector.load %arg4[%c0_4, %c0_5] : memref<4x1xf32, #tpu.memory_space<vmem>>, vector<4x1xf32>
    %5 = vector.broadcast %4 : vector<4x1xf32> to vector<4x64xf32>
    %6 = arith.addf %3, %5 : vector<4x64xf32>
    %c0_6 = arith.constant 0 : index
    %c0_7 = arith.constant 0 : index
    %7 = memref.load %arg5[%c0_6, %c0_7] : memref<1x1xf32, #tpu.memory_space<smem>>
    %cst_8 = arith.constant 0.000000e+00 : f32
    %8 = vector.broadcast %cst_8 : f32 to vector<4x64xf32>
    %9 = arith.cmpf oge, %6, %8 : vector<4x64xf32>
    %10 = vector.broadcast %7 : f32 to vector<4x64xf32>
    %11 = arith.mulf %10, %6 : vector<4x64xf32>
    %12 = arith.select %9, %6, %11 : vector<4x64xi1>, vector<4x64xf32>
    %c0_9 = arith.constant 0 : index
    %c0_10 = arith.constant 0 : index
    %c0_11 = arith.constant 0 : index
    %13 = vector.load %arg6[%c0_9, %c0_10, %c0_11] : memref<1x4x64xf32, #tpu.memory_space<vmem>>, vector<1x4x64xf32>
    %14 = vector.shape_cast %13 : vector<1x4x64xf32> to vector<4x64xf32>
    %15 = vector.shape_cast %12 : vector<4x64xf32> to vector<1x4x64xf32>
    tpu.vector_store %arg6[%c0_9, %c0_10, %c0_11], %15 {strides = array<i32>} : memref<1x4x64xf32, #tpu.memory_space<vmem>>, vector<1x4x64xf32>,
    return
  }
  func.func @transform_0(%arg0: i32, %arg1: i32) -> (i32, i32, i32) {
    %c0_i32 = arith.constant 0 : i32
    %c0_i32_0 = arith.constant 0 : i32
    return %arg0, %c0_i32, %arg1 : i32, i32, i32
  }
  func.func @transform_1(%arg0: i32, %arg1: i32) -> (i32, i32) {
    %c0_i32 = arith.constant 0 : i32
    %c0_i32_0 = arith.constant 0 : i32
    %c0_i32_1 = arith.constant 0 : i32
    return %c0_i32, %c0_i32_0 : i32, i32
  }
  func.func @transform_2(%arg0: i32, %arg1: i32) -> (i32, i32) {
    %c0_i32 = arith.constant 0 : i32
    %c0_i32_0 = arith.constant 0 : i32
    %c0_i32_1 = arith.constant 0 : i32
    return %c0_i32, %c0_i32_0 : i32, i32
  }
  func.func @transform_3(%arg0: i32, %arg1: i32) -> (i32, i32) {
    %c0_i32 = arith.constant 0 : i32
    %c0_i32_0 = arith.constant 0 : i32
    %c0_i32_1 = arith.constant 0 : i32
    return %c0_i32, %c0_i32_0 : i32, i32
  }
  func.func @transform_4(%arg0: i32, %arg1: i32) -> (i32, i32, i32) {
    %c0_i32 = arith.constant 0 : i32
    %c0_i32_0 = arith.constant 0 : i32
    return %arg0, %c0_i32, %arg1 : i32, i32, i32
  }
}

</mosaic_0001>

<bundles_post_ra>
// kernel: tpu_custom_call.1
= control target key start
LH: loop header
LB: loop body
LE: loop exit
PB: predicated region body
PF: predicated region fallthrough
CT: control target
= control target key end

     0   :  { %s707_s0 = inlined_call_operand.vmem [shape: f32[2,4,64], index: 0, kind: input, shape index: {}]   ;;  %s708_s1 = inlined_call_operand.vmem [shape: f32[4,4], index: 1, kind: input, shape index: {}]   ;;  %s709_s2 = inlined_call_operand.vmem [shape: f32[4,1], index: 2, kind: input, shape index: {}]   ;;  %s710_s3 = inlined_call_operand.<no memory space> [shape: f32[1,1], index: 3, kind: input, shape index: {}]   ;;  %s711_s4 = inlined_call_operand.hbm [shape: f32[2,4,64], index: 4, kind: output, shape index: {}]  }
   0x1   :  { %9 = sst [smem:[#allocation2]] %s710_s3 }
   0x2   :  { %10 = vsyncpa [#allocation4], 0 }
   0x3   :  { %12 = vsyncpa [#allocation4 + $0x1], 0  ;;  %s589_s17 = smov 0   ;;  %s591_s18 = smov 0  }
   0x4   :  { %s593_s19 = smov 0   ;;  %s595_s20 = smov 0  }
   0x5   :  { %s597_s21 = smov 0   ;;  %s599_s22 = smov 0  }
   0x6 LB: > { %s398_s3 = sadd.s32 4294967295, %s555_s22   ;;  %s399_s23 = sadd.s32 4294967294, %s555_s22   ;;  %s555_s22 = sphi %s599_s22, %s18_s22   ;;  %s551_s21 = sphi %s597_s21, %s718_s21   ;;  %s547_s20 = sphi %s595_s20, %s717_s20   ;;  %s543_s19 = sphi %s593_s19, %s716_s19   ;;  %s539_s18 = sphi %s591_s18, %s715_s18   ;;  %s535_s17 = sphi %s589_s17, %s714_s17  }
   0x7   : > { %s30_s24 = sadd.s32 1, %s551_s21  ;;  %s130_s25 = sadd.s32 1, %s543_s19 }
   0x8   : > { %p32_p0 = scmp.ge.s32.totalorder %s30_s24, 2  ;;  %p140_p1 = scmp.ne.s32.totalorder %s543_s19, %s539_s18 }
   0x9   : > { %p141_p2 = scmp.eq.s32.totalorder %s398_s3, 1  ;;  %p146_p3 = scmp.ne.s32.totalorder %s539_s18, %s535_s17 }
   0xa   : > { %s720_s24 = smov (%p32_p0, %s30_s24), 0  ;;  %p147_p5 = scmp.eq.s32.totalorder %s399_s23, 1 }
   0xb   : > { %p629_p4 = por %p141_p2, %p140_p1  ;;  %s125_s27 = ssub.s32 %s551_s21, %s720_s24 }
   0xc   : > { %p402_p6 = scmp.ge.s32.totalorder %s555_s22, 1  ;;  %p128_p7 = scmp.eq.s32.totalorder %s125_s27, 0 }
   0xd   : > { %p636_p8 = por %p147_p5, %p146_p3  ;;  %p184_p9 = scmp.lt.s32.totalorder %s555_s22, 3 }
   0xe   : > { %s642_s29 = scalar_select %p128_p7, %s543_s19, %s130_s25  }
   0xf   : > { %p185_p10 = pnand %p402_p6, %p184_p9 }
  0x10   : > { %p212_p11 = scmp.lt.s32.totalorder (!%p185_p10), %s547_s20, 1  ;;  %v557_v0 = vmov (!%p185_p10), 0.0   ;;  %vm558_vm0 = vmmov (!%p185_p10), 0   ;;  %v221_v1 = vld [vmem:[%s709_s2] sm:$0xf] (!%p185_p10)  ;;  %v559_v2 = vmov (!%p185_p10), 0  }
  0x11   : > { %188 = sbr.rel (%p185_p10) target bundleno = 261 (0x105), region = 36  ;;  %413 = vmatprep.subr.mxu0 (!%p185_p10), %v557_v0  ;;  %415 = vmatprep.mubr.msk.f32.mxu0 (!%p185_p10), %vm558_vm0, %v557_v0  ;;  %vm231_vm1 = vcmask (!%p185_p10), 1043456   ;;  %v219_v3 = vld [vmem:[%s708_s1] sm:$0xf] (!%p185_p10)  ;;  %vm227_vm2 = vcmask (!%p185_p10), 31744   ;;  %s305_s13 = sld [smem:[#allocation2]] (!%p185_p10) }
  0x12   : > { %476 = vset.pattern.permute.xlu0 (!%p185_p10), %v559_v2  ;;  %s209_s14 = sand.u32 (!%p185_p10), 1, %s539_s18   ;;  %s408_s16 = sshll.u32 (!%p185_p10), %s547_s20, 6  ;;  %vm310_vm4 = vcmask (!%p185_p10), 519168  }
  0x13   : > { %224 = vperm.xlu0 (!%p185_p10), %476, %v221_v1   ;;  %s403_s15 = sshll.u32 (!%p185_p10), %s209_s14, 2  ;;  %s660_s30 = scalar_lea.hbm (!%p185_p10), %s711_s4, %s408_s16 }
  0x14   : > { %s211_s3 = scalar_lea.vmem (!%p185_p10), [#allocation3], %s403_s15  ;;  %s313_s5 = scalar_lea.sflag (!%p185_p10), [#allocation4], %s209_s14 }
  0x15   : > { %s327_s23 = sshll.u32 (!%p185_p10), %s211_s3, 4  ;;  %s662_s23 = int_to_ptr.vmem [resolvable:$true] %s327_s23 }
  0x17   : > { %v307_v7 = vstv (!%p185_p10), %s305_s13 }
  0x18   : > { %s213_s6 = scalar_select %p212_p11, %s547_s20, 1 }
  0x19   : > { %s560_s20 = smov [#allocation3]  }
  0x1a   : > { %s404_s7 = sshll.u32 %s213_s6, 2  ;;  %s477_s6 = scalar_lea.vmem %s662_s23, 64 }
  0x1b   : > { %s218_s10 = scalar_lea.vmem %s707_s0, %s404_s7  ;;  %p478_p12 = scmp.ne.s32.totalorder %s662_s23, %s477_s6 }
  0x1c   : > { %v220_v4 = vld [vmem:[%s218_s10] sm:$0xf]  ;;  %s481_s7 = sshll.u32 %s560_s20, 4  ;;  %s482_s7 = int_to_ptr.vmem [resolvable:$false] %s481_s7 }
  0x1d   : > { %414 = vmatpush3.msk.msra.mxu0 %vm231_vm1, %v220_v4  ;;  %p479_p13 = pnand %p478_p12, %p629_p4  ;;  %s483_s8 = scalar_lea.vmem %s482_s7, 128 }
  0x1e   : > { %416 = vmatmul.mubr.msk.f32.vlgmr.msra.gmra.mrb[0].mxu0 %vm227_vm2, %v219_v3  ;;  %p484_p1 = scmp.lt.s32.totalorder %s662_s23, %s482_s7  ;;  %p485_p2 = scmp.lt.s32.totalorder %s483_s8, %s477_s6 }
  0x1f   : > { %p480_p0 = pneg %p479_p13 }
  0x20   : > { %p486_p3 = por %p485_p2, %p484_p1 }
  0x22   : > { %p487_p5 = pnand %p486_p3, %p480_p0 }
  0x92   : > { %v225_v5 = vpop.permute.xlu0 %224 }
  0xf1   : > { %v301_v6 = vpop.f32.mrb[0].mxu0 }
  0xf2   : > { %v302_v8 = vadd.f32 %v301_v6, %v225_v5  ;;  %v417_v9 = vpop.f32.mrb[1].mxu0 }
  0xf4   : > { %vm306_vm3 = vcmp.ge.f32.partialorder %v302_v8, 0.0  ;;  %v308_v10 = vmul.f32 %v307_v7, %v302_v8 }
  0xf6   : > { %v309_v11 = vsel %vm306_vm3, %v302_v8, %v308_v10 }
  0xf7   : > { %311 = vst.msk [vmem:[%s211_s3] sm:$0xf] %vm310_vm4, %v309_v11 }
  0xf8   : > { %490 = shalt.err (!%p487_p5)
}
  0xf9   : > { %s491_s9 = scalar_lea.hbm %s660_s30, 64  ;;  %s495_s12 = scalar_lea.hbm %s711_s4, 128 }
  0xfa   : > { %p492_p6 = scmp.ne.s32.totalorder %s660_s30, %s491_s9  ;;  %p496_p10 = scmp.lt.u32.totalorder %s660_s30, %s711_s4 }
  0xfb   : > { %p497_p11 = scmp.lt.u32.totalorder %s495_s12, %s491_s9  ;;  %p499_p13 = scmp.lt.u32.totalorder %s491_s9, %s660_s30 }
  0xfc   : > { %p493_p7 = pnand %p492_p6, %p629_p4 }
  0xfd   : > { %p498_p12 = por %p497_p11, %p496_p10 }
  0xfe   : > { %p494_p9 = pneg %p493_p7 }
  0xff   : > { %p500_p0 = por %p499_p13, %p498_p12 }
 0x101   : > { %p501_p1 = pnand %p500_p0, %p494_p9 }
 0x103   : > { %504 = shalt.err (!%p501_p1)
}
 0x104   : > { %418 = dma.vmem_to_hbm [thread:$0]  (%p629_p4), %s662_s23, 64, %s660_s30, %s313_s5  }
 0x105 PF: > { %p424_p2 = scmp.ge.s32.totalorder %s555_s22, 2  ;;  %s339_s15 = sand.u32 1, %s535_s17  }
 0x106   : > { %s340_s16 = scalar_lea.sflag [#allocation4], %s339_s15 }
 0x107   : > { %p421_p3 = pnand %p424_p2, %p636_p8 }
 0x109   : > { %530 = dma.done.wait (!%p421_p3), %s340_s16, 64  }
 0x10a   : > { %532 = vsyncadd (!%p421_p3), %s340_s16, 4294967232  ;;  %s18_s22 = sadd.s32 1, %s555_s22   ;;  %s714_s17 = smov %s539_s18 }
 0x10b   : > { %p15_p5 = scmp.ge.s32.totalorder %s18_s22, 4   ;;  %s715_s18 = smov %s543_s19 }
 0x10c   : > { %s716_s19 = smov %s642_s29  ;;  %s717_s20 = smov %s551_s21 }
 0x10d   : > { %s718_s21 = smov %s720_s24  ;;  %17 = sbr.rel (!%p15_p5) target bundleno = 6 (0x6), region = 71 }
 0x114   :  { %345 = vsyncpa [#allocation4], 1 }
 0x115   :  { %347 = vsyncpa [#allocation4 + $0x1], 1 }

</bundles_post_ra>
